<compile_context>
chip_gen: v7x
topology: tpu7x:2x2x1
jax: 0.10.0
libtpu: 0.0.40
codegen_flags: <defaults>
</compile_context>

<pallas_src>
import jax
import jax.numpy as jnp
from jax.experimental import pallas as pl
from jax.experimental.pallas import tpu as pltpu

LANE = 128


def _pad_axis(x, axis, size):
    pad = size - x.shape[axis]
    if pad <= 0:
        return x
    widths = [(0, 0)] * x.ndim
    widths[axis] = (0, pad)
    return jnp.pad(x, widths)


# ----------------------------------------------------------------------------
# Fused kernel: conv(im2col matmul) + ReLU + global-avg-pool (matmul) +
#               bottleneck Linear (BN folded) + ReLU + head Linear.
# ----------------------------------------------------------------------------
def fused_kernel(patches_ref, pool_ref, w_ref, b_ref, o_ref):
    # patches_ref: (R, 128)      bf16  im2col rows, R = N*H*W, K padded to 128
    # pool_ref:    (N, R)        bf16  block-diagonal 1/(H*W) average-pool matrix
    # w_ref:       (3, 128, 128) bf16  [conv_w | bottleneck_w (BN folded) | head_w]
    # b_ref:       (3, 128)      f32   [conv_b | bottleneck_b (BN folded) | head_b]
    # o_ref:       (N, 128)      f32   logits, lane-padded (sliced in the wrapper)

    # Backbone conv (3x3, same) as one im2col matmul -> bias -> ReLU (f32 epilogue).
    acts = jnp.dot(patches_ref[...], w_ref[0], preferred_element_type=jnp.float32)
    acts = jnp.maximum(acts + b_ref[0:1, :], 0.0)                    # (R, 128)

    # Global average pool over spatial dims as a matmul (stays on the MXU).
    feats = jnp.dot(pool_ref[...], acts.astype(jnp.bfloat16),
                    preferred_element_type=jnp.float32)              # (N, 128)

    # Bottleneck Linear (+ folded BatchNorm1d eval) + ReLU.
    h = jnp.dot(feats.astype(jnp.bfloat16), w_ref[1],
                preferred_element_type=jnp.float32) + b_ref[1:2, :]
    h = jnp.maximum(h, 0.0)

    # Head Linear.
    o = jnp.dot(h.astype(jnp.bfloat16), w_ref[2],
                preferred_element_type=jnp.float32) + b_ref[2:3, :]
    o_ref[...] = o


# ----------------------------------------------------------------------------
# Wrapper (XLA glue: layout, im2col, padding, BN folding — tiny data, not hot path)
# ----------------------------------------------------------------------------
@jax.jit
def tlib_classifier_forward(x_nchw, params):
    conv_w = params["conv_w"]          # (KH, KW, Cin, Cout)
    conv_b = params["conv_b"]          # (1, Cout)
    bot_w = params["bot_w"]            # (Cout, Bdim)
    bot_b = params["bot_b"]            # (1, Bdim)
    gamma = params["bn_gamma"]         # (1, Bdim)
    beta = params["bn_beta"]           # (1, Bdim)
    bn_mean = params["bn_mean"]        # (1, Bdim)
    bn_var = params["bn_var"]          # (1, Bdim)
    head_w = params["head_w"]          # (Bdim, n_classes)
    head_b = params["head_b"]          # (1, n_classes)
    eps = 1e-5

    N, Cin, H, W = x_nchw.shape
    KH, KW, _, Cout = conv_w.shape
    Bdim = bot_w.shape[1]
    n_classes = head_w.shape[1]
    R = N * H * W
    K = KH * KW * Cin
    assert K <= LANE and Cout <= LANE and Bdim <= LANE and n_classes <= LANE

    # NCHW -> NHWC, "same" padding (separate pad_h / pad_w so KW != KH stays correct).
    x_nhwc = jnp.transpose(x_nchw, (0, 2, 3, 1)).astype(jnp.float32)
    pad_h, pad_w = (KH - 1) // 2, (KW - 1) // 2
    x_pad = jnp.pad(x_nhwc, ((0, 0), (pad_h, pad_h), (pad_w, pad_w), (0, 0)))

    # im2col patch matrix, tap-major order matching conv_w.reshape(K, Cout).
    taps = [x_pad[:, kh:kh + H, kw:kw + W, :]
            for kh in range(KH) for kw in range(KW)]
    patches = jnp.concatenate(taps, axis=-1).reshape(R, K)
    patches = _pad_axis(patches, 1, LANE).astype(jnp.bfloat16)        # (R, 128)

    # Block-diagonal average-pool matrix: pool[n, r] = 1/(H*W) if row r belongs to image n.
    row_img = jnp.arange(R, dtype=jnp.int32) // (H * W)
    pool = (jnp.arange(N, dtype=jnp.int32)[:, None] == row_img[None, :])
    pool = (pool.astype(jnp.float32) / float(H * W)).astype(jnp.bfloat16)  # (N, R)

    # Fold BatchNorm1d (eval) into the bottleneck Linear.
    bn_scale = gamma / jnp.sqrt(bn_var + eps)                         # (1, Bdim)
    bn_shift = beta - bn_mean * bn_scale
    w1 = bot_w * bn_scale                                             # (Cout, Bdim)
    b1 = bot_b * bn_scale + bn_shift                                  # (1, Bdim)

    # Pad all params to 128x128 / 128-lane tiles and stack -> few dense operand DMAs.
    cw_p = _pad_axis(_pad_axis(conv_w.reshape(K, Cout), 0, LANE), 1, LANE)
    w1_p = _pad_axis(_pad_axis(w1, 0, LANE), 1, LANE)
    w2_p = _pad_axis(_pad_axis(head_w, 0, LANE), 1, LANE)
    w_stack = jnp.stack([cw_p, w1_p, w2_p]).astype(jnp.bfloat16)      # (3, 128, 128)
    b_stack = jnp.stack([_pad_axis(conv_b, 1, LANE)[0],
                         _pad_axis(b1, 1, LANE)[0],
                         _pad_axis(head_b, 1, LANE)[0]]).astype(jnp.float32)  # (3, 128)

    vmem = pl.BlockSpec(memory_space=pltpu.MemorySpace.VMEM)
    out_padded = pl.pallas_call(
        fused_kernel,
        out_shape=jax.ShapeDtypeStruct((N, LANE), jnp.float32),
        in_specs=[vmem, vmem, vmem, vmem],
        out_specs=vmem,
    )(patches, pool, w_stack, b_stack)

    return out_padded[:, :n_classes]


def init_params(key, cin=4, cout=32, bottleneck_dim=16, n_classes=10, kh=3, kw=3):
    ks = jax.random.split(key, 6)
    conv_w = 0.1 * jax.random.normal(ks[0], (kh, kw, cin, cout), jnp.float32)
    conv_b = 0.01 * jax.random.normal(ks[1], (1, cout), jnp.float32)
    bot_w = 0.1 * jax.random.normal(ks[2], (cout, bottleneck_dim), jnp.float32)
    bot_b = 0.01 * jax.random.normal(ks[3], (1, bottleneck_dim), jnp.float32)
    # BatchNorm1d eval-mode statistics / affine params.
    bn_gamma = jnp.ones((1, bottleneck_dim), jnp.float32)
    bn_beta = jnp.zeros((1, bottleneck_dim), jnp.float32)
    bn_mean = jnp.zeros((1, bottleneck_dim), jnp.float32)
    bn_var = jnp.ones((1, bottleneck_dim), jnp.float32)
    head_w = 0.1 * jax.random.normal(ks[4], (bottleneck_dim, n_classes), jnp.float32)
    head_b = 0.01 * jax.random.normal(ks[5], (1, n_classes), jnp.float32)
    return dict(conv_w=conv_w, conv_b=conv_b, bot_w=bot_w, bot_b=bot_b,
                bn_gamma=bn_gamma, bn_beta=bn_beta, bn_mean=bn_mean, bn_var=bn_var,
                head_w=head_w, head_b=head_b)


if __name__ == "__main__":
    key = jax.random.PRNGKey(0)
    k_x, k_p = jax.random.split(key)

    # Small shapes consistent with an image-classifier forward.
    N, Cin, H, W = 2, 4, 16, 16
    x = jax.random.normal(k_x, (N, Cin, H, W), jnp.float32)   # NCHW like PyTorch
    params = init_params(k_p, cin=Cin, cout=32, bottleneck_dim=16, n_classes=10)

    out = tlib_classifier_forward(x, params)
    out = jax.block_until_ready(out)
    assert out.shape == (N, 10), out.shape
    assert jnp.all(jnp.isfinite(out))
    print("KERNEL_OK")
</pallas_src>

<mosaic_0001>
module attributes {stable_mosaic.version = 11 : i64} {
  func.func @fused_kernel(%arg0: memref<512x128xbf16, #tpu.memory_space<vmem>>, %arg1: memref<2x512xbf16, #tpu.memory_space<vmem>>, %arg2: memref<3x128x128xbf16, #tpu.memory_space<vmem>>, %arg3: memref<3x128xf32, #tpu.memory_space<vmem>>, %arg4: memref<2x128xf32, #tpu.memory_space<vmem>>) attributes {dimension_semantics = [], scalar_prefetch = 0 : i64, scratch_operands = 0 : i64, tpu.core_type = #tpu.core_type<tc>} {
    %c0 = arith.constant 0 : index
    %c0_0 = arith.constant 0 : index
    %0 = vector.load %arg0[%c0, %c0_0] : memref<512x128xbf16, #tpu.memory_space<vmem>>, vector<512x128xbf16>
    %c0_1 = arith.constant 0 : index
    %c0_2 = arith.constant 0 : index
    %c0_3 = arith.constant 0 : index
    %1 = vector.load %arg2[%c0_1, %c0_2, %c0_3] : memref<3x128x128xbf16, #tpu.memory_space<vmem>>, vector<1x128x128xbf16>
    %2 = vector.shape_cast %1 : vector<1x128x128xbf16> to vector<128x128xbf16>
    %cst = arith.constant dense<0.000000e+00> : vector<512x128xf32>
    %3 = tpu.matmul %0, %2, %cst {dimension_numbers = #tpu.dot_dimension_numbers<[1], [0], [0], [1], [0, 0, 1, 1], [], []>} : vector<512x128xbf16>, vector<128x128xbf16>, vector<512x128xf32> -> vector<512x128xf32>
    %c0_4 = arith.constant 0 : index
    %c0_5 = arith.constant 0 : index
    %4 = vector.load %arg3[%c0_4, %c0_5] : memref<3x128xf32, #tpu.memory_space<vmem>>, vector<1x128xf32>
    %5 = vector.broadcast %4 : vector<1x128xf32> to vector<512x128xf32>
    %6 = arith.addf %3, %5 : vector<512x128xf32>
    %cst_6 = arith.constant 0.000000e+00 : f32
    %7 = vector.broadcast %cst_6 : f32 to vector<512x128xf32>
    %8 = arith.maximumf %6, %7 : vector<512x128xf32>
    %c0_7 = arith.constant 0 : index
    %c0_8 = arith.constant 0 : index
    %9 = vector.load %arg1[%c0_7, %c0_8] : memref<2x512xbf16, #tpu.memory_space<vmem>>, vector<2x512xbf16>
    %10 = arith.truncf %8 : vector<512x128xf32> to vector<512x128xbf16>
    %cst_9 = arith.constant dense<0.000000e+00> : vector<2x128xf32>
    %11 = tpu.matmul %9, %10, %cst_9 {dimension_numbers = #tpu.dot_dimension_numbers<[1], [0], [0], [1], [0, 0, 1, 1], [], []>} : vector<2x512xbf16>, vector<512x128xbf16>, vector<2x128xf32> -> vector<2x128xf32>
    %12 = arith.truncf %11 : vector<2x128xf32> to vector<2x128xbf16>
    %c1 = arith.constant 1 : index
    %c0_10 = arith.constant 0 : index
    %c0_11 = arith.constant 0 : index
    %13 = vector.load %arg2[%c1, %c0_10, %c0_11] : memref<3x128x128xbf16, #tpu.memory_space<vmem>>, vector<1x128x128xbf16>
    %14 = vector.shape_cast %13 : vector<1x128x128xbf16> to vector<128x128xbf16>
    %cst_12 = arith.constant dense<0.000000e+00> : vector<2x128xf32>
    %15 = tpu.matmul %12, %14, %cst_12 {dimension_numbers = #tpu.dot_dimension_numbers<[1], [0], [0], [1], [0, 0, 1, 1], [], []>} : vector<2x128xbf16>, vector<128x128xbf16>, vector<2x128xf32> -> vector<2x128xf32>
    %c1_13 = arith.constant 1 : index
    %c0_14 = arith.constant 0 : index
    %16 = vector.load %arg3[%c1_13, %c0_14] : memref<3x128xf32, #tpu.memory_space<vmem>>, vector<1x128xf32>
    %17 = vector.broadcast %16 : vector<1x128xf32> to vector<2x128xf32>
    %18 = arith.addf %15, %17 : vector<2x128xf32>
    %cst_15 = arith.constant 0.000000e+00 : f32
    %19 = vector.broadcast %cst_15 : f32 to vector<2x128xf32>
    %20 = arith.maximumf %18, %19 : vector<2x128xf32>
    %21 = arith.truncf %20 : vector<2x128xf32> to vector<2x128xbf16>
    %c2 = arith.constant 2 : index
    %c0_16 = arith.constant 0 : index
    %c0_17 = arith.constant 0 : index
    %22 = vector.load %arg2[%c2, %c0_16, %c0_17] : memref<3x128x128xbf16, #tpu.memory_space<vmem>>, vector<1x128x128xbf16>
    %23 = vector.shape_cast %22 : vector<1x128x128xbf16> to vector<128x128xbf16>
    %cst_18 = arith.constant dense<0.000000e+00> : vector<2x128xf32>
    %24 = tpu.matmul %21, %23, %cst_18 {dimension_numbers = #tpu.dot_dimension_numbers<[1], [0], [0], [1], [0, 0, 1, 1], [], []>} : vector<2x128xbf16>, vector<128x128xbf16>, vector<2x128xf32> -> vector<2x128xf32>
    %c2_19 = arith.constant 2 : index
    %c0_20 = arith.constant 0 : index
    %25 = vector.load %arg3[%c2_19, %c0_20] : memref<3x128xf32, #tpu.memory_space<vmem>>, vector<1x128xf32>
    %26 = vector.broadcast %25 : vector<1x128xf32> to vector<2x128xf32>
    %27 = arith.addf %24, %26 : vector<2x128xf32>
    %c0_21 = arith.constant 0 : index
    %c0_22 = arith.constant 0 : index
    %28 = vector.load %arg4[%c0_21, %c0_22] : memref<2x128xf32, #tpu.memory_space<vmem>>, vector<2x128xf32>
    tpu.vector_store %arg4[%c0_21, %c0_22], %27 {strides = array<i32>} : memref<2x128xf32, #tpu.memory_space<vmem>>, vector<2x128xf32>,
    return
  }
}

</mosaic_0001>

<bundles_post_ra>
// kernel: tlib_classifier_forward.1
= control target key start
LH: loop header
LB: loop body
LE: loop exit
PB: predicated region body
PF: predicated region fallthrough
CT: control target
= control target key end

     0   :  { %s1822_s0 = inlined_call_operand.vmem [shape: bf16[512,128], index: 0, kind: input, shape index: {}]   ;;  %s1823_s1 = inlined_call_operand.vmem [shape: bf16[2,512], index: 1, kind: input, shape index: {}]   ;;  %s1824_s2 = inlined_call_operand.vmem [shape: bf16[3,128,128], index: 2, kind: input, shape index: {}]   ;;  %s1825_s3 = inlined_call_operand.vmem [shape: f32[3,128], index: 3, kind: input, shape index: {}]   ;;  %s1826_s4 = inlined_call_operand.hbm [shape: f32[2,128], index: 4, kind: output, shape index: {}]  }
   0x1   :  { %v1395_v0 = vld [vmem:[%s1824_s2] sm:$0xff]   ;;  %v1396_v1 = vld [vmem:[%s1824_s2 + $0x8] sm:$0xff]   ;;  %v1397_v2 = vld [vmem:[%s1824_s2 + $0x10] sm:$0xff]  }
   0x2   :  { %1271 = vmatprep.subr.bf16.mxu0 %v1395_v0  ;;  %v1398_v3 = vld [vmem:[%s1824_s2 + $0x18] sm:$0xff]   ;;  %v1403_v4 = vld [vmem:[%s1822_s0] sm:$0xff]   ;;  %v1400_v6 = vld [vmem:[%s1824_s2 + $0x28] sm:$0xff]  }
   0x3   :  { %1272 = vmatpush3.bf16.msra.mxu0 %v1395_v0  ;;  %1287 = vmatprep.mubr.bf16.mxu0 %v1403_v4  ;;  %v1399_v5 = vld [vmem:[%s1824_s2 + $0x20] sm:$0xff]   ;;  %v1401_v7 = vld [vmem:[%s1824_s2 + $0x30] sm:$0xff]   ;;  %v1402_v8 = vld [vmem:[%s1824_s2 + $0x38] sm:$0xff]  }
   0x4   :  { %1273 = vmatprep.subr.bf16.mxu0 %v1396_v1  ;;  %v1404_v9 = vld [vmem:[%s1822_s0 + $0x8] sm:$0xff]   ;;  %v1405_v10 = vld [vmem:[%s1822_s0 + $0x10] sm:$0xff]   ;;  %v1406_v11 = vld [vmem:[%s1822_s0 + $0x18] sm:$0xff]  }
   0x5   :  { %v1407_v12 = vld [vmem:[%s1822_s0 + $0x20] sm:$0xff]   ;;  %v1408_v13 = vld [vmem:[%s1822_s0 + $0x28] sm:$0xff]   ;;  %v1409_v14 = vld [vmem:[%s1822_s0 + $0x30] sm:$0xff]  }
   0x7   :  { %1274 = vmatpush3.bf16.msra.mxu0 %v1396_v1 }
   0x8   :  { %1275 = vmatprep.subr.bf16.mxu0 %v1397_v2 }
   0xb   :  { %1276 = vmatpush3.bf16.msra.mxu0 %v1397_v2 }
   0xc   :  { %1277 = vmatprep.subr.bf16.mxu0 %v1398_v3 }
   0xf   :  { %1278 = vmatpush3.bf16.msra.mxu0 %v1398_v3 }
  0x10   :  { %1279 = vmatprep.subr.bf16.mxu0 %v1399_v5 }
  0x13   :  { %1280 = vmatpush3.bf16.msra.mxu0 %v1399_v5 }
  0x14   :  { %1281 = vmatprep.subr.bf16.mxu0 %v1400_v6 }
  0x17   :  { %1282 = vmatpush3.bf16.msra.mxu0 %v1400_v6 }
  0x18   :  { %1283 = vmatprep.subr.bf16.mxu0 %v1401_v7 }
  0x1b   :  { %1284 = vmatpush3.bf16.msra.mxu0 %v1401_v7 }
  0x1c   :  { %1285 = vmatprep.subr.bf16.mxu0 %v1402_v8 }
  0x1f   :  { %1286 = vmatpush3.bf16.msra.mxu0 %v1402_v8 }
  0x22   :  { %1288 = vmatmul.mubr.bf16.vlgmr.msra.gmra.mrb[0].mxu0 %v1404_v9 }
  0x23   :  { %1291 = vmatprep.mubr.bf16.mxu0 %v1405_v10 }
  0x2a   :  { %1292 = vmatmul.mubr.bf16.gmra.mrb[4].mxu0 %v1406_v11 }
  0x2b   :  { %1295 = vmatprep.mubr.bf16.mxu0 %v1407_v12 }
  0x32   :  { %1296 = vmatmul.mubr.bf16.gmra.mrb[8].mxu0 %v1408_v13 }
  0x33   :  { %9 = vsyncpa [#allocation3], 0  ;;  %1299 = vmatprep.mubr.bf16.mxu0 %v1409_v14  ;;  %v1410_v15 = vld [vmem:[%s1822_s0 + $0x38] sm:$0xff]   ;;  %v1411_v16 = vld [vmem:[%s1822_s0 + $0x40] sm:$0xff]   ;;  %v1475_v40 = vmov 1966171168   ;;  %v742_v42 = vlaneseq }
  0x34   :  { %v1412_v17 = vld [vmem:[%s1822_s0 + $0x48] sm:$0xff]   ;;  %v1413_v18 = vld [vmem:[%s1822_s0 + $0x50] sm:$0xff]   ;;  %v1414_v19 = vld [vmem:[%s1822_s0 + $0x58] sm:$0xff]   ;;  %v740_v41 = vunpack.c.l.s4 %v1475_v40  ;;  %vm1477_vm0 = vmmov 0   ;;  %s1478_s27 = smov [#allocation2]  }
  0x35   :  { %v1415_v20 = vld [vmem:[%s1822_s0 + $0x60] sm:$0xff]   ;;  %v1416_v21 = vld [vmem:[%s1822_s0 + $0x68] sm:$0xff]   ;;  %v1417_v22 = vld [vmem:[%s1822_s0 + $0x70] sm:$0xff]   ;;  %v743_v44 = vshrl.u32 %v742_v42, 7  ;;  %s1069_s28 = sshll.u32 %s1478_s27, 4  ;;  %s1070_s28 = int_to_ptr.vmem [resolvable:$true] %s1069_s28 }
  0x36   :  { %v1418_v23 = vld [vmem:[%s1822_s0 + $0x78] sm:$0xff]   ;;  %v1419_v24 = vld [vmem:[%s1822_s0 + $0x80] sm:$0xff]   ;;  %v1420_v25 = vld [vmem:[%s1822_s0 + $0x88] sm:$0xff]   ;;  %v741_v43 = vunpack.c.0.s8 %v740_v41  ;;  %p1456_p1 = scmp.lt.s32.totalorder %s1070_s28, %s1070_s28 }
  0x37   :  { %v1421_v26 = vld [vmem:[%s1822_s0 + $0x90] sm:$0xff]   ;;  %v1422_v27 = vld [vmem:[%s1822_s0 + $0x98] sm:$0xff]   ;;  %v1423_v28 = vld [vmem:[%s1822_s0 + $0xa0] sm:$0xff]  }
  0x38   :  { %v1424_v29 = vld [vmem:[%s1822_s0 + $0xa8] sm:$0xff]   ;;  %v1425_v30 = vld [vmem:[%s1822_s0 + $0xb0] sm:$0xff]   ;;  %v1426_v31 = vld [vmem:[%s1822_s0 + $0xb8] sm:$0xff]   ;;  %v744_v47 = vsub.s32 %v741_v43, %v743_v44 }
  0x39   :  { %v1427_v32 = vld [vmem:[%s1822_s0 + $0xc0] sm:$0xff]   ;;  %v1428_v33 = vld [vmem:[%s1822_s0 + $0xc8] sm:$0xff]   ;;  %v1429_v34 = vld [vmem:[%s1822_s0 + $0xd0] sm:$0xff]  }
  0x3a   :  { %1300 = vmatmul.mubr.bf16.gmra.mrb[12].mxu0 %v1410_v15  ;;  %v1430_v35 = vld [vmem:[%s1822_s0 + $0xd8] sm:$0xff]   ;;  %v1431_v36 = vld [vmem:[%s1822_s0 + $0xe0] sm:$0xff]   ;;  %v1432_v37 = vld [vmem:[%s1822_s0 + $0xe8] sm:$0xff]  }
  0x3b   :  { %1303 = vmatprep.mubr.bf16.mxu0 %v1411_v16  ;;  %v1433_v38 = vld [vmem:[%s1822_s0 + $0xf0] sm:$0xff]   ;;  %v1434_v39 = vld [vmem:[%s1822_s0 + $0xf8] sm:$0xff]   ;;  %v1118_v45 = vld.sshfl [vmem:[%s1823_s1] sm:$0x33 pattern:$0x75316420] }
  0x3c   :  { %v738_v46 = vcombine.high %v1118_v45, %v1118_v45  ;;  %v1629_v49 = vrot.slane %v1118_v45, %v744_v47  ;;  %v1635_v50 = vld [vmem:[%s1825_s3] ss:$0 sm:$0xff] }
  0x3e   :  { %v1627_v48 = vrot.slane %v738_v46, %v744_v47 }
  0x40   :  { %791 = vmatprep.mubr.bf16.mxu1 %v1627_v48 }
  0x42   :  { %1304 = vmatmul.mubr.bf16.gmra.mrb[16].mxu0 %v1412_v17 }
  0x43   :  { %1307 = vmatprep.mubr.bf16.mxu0 %v1413_v18 }
  0x4a   :  { %1308 = vmatmul.mubr.bf16.gmra.mrb[20].mxu0 %v1414_v19 }
  0x4b   :  { %1311 = vmatprep.mubr.bf16.mxu0 %v1415_v20 }
  0x52   :  { %1312 = vmatmul.mubr.bf16.gmra.mrb[24].mxu0 %v1416_v21 }
  0x53   :  { %1315 = vmatprep.mubr.bf16.mxu0 %v1417_v22 }
  0x5a   :  { %1316 = vmatmul.mubr.bf16.gmra.mrb[28].mxu0 %v1418_v23 }
  0x5b   :  { %1319 = vmatprep.mubr.bf16.mxu0 %v1419_v24 }
  0x62   :  { %1320 = vmatmul.mubr.bf16.gmra.mrb[32].mxu0 %v1420_v25 }
  0x63   :  { %1323 = vmatprep.mubr.bf16.mxu0 %v1421_v26 }
  0x6a   :  { %1324 = vmatmul.mubr.bf16.gmra.mrb[36].mxu0 %v1422_v27 }
  0x6b   :  { %1327 = vmatprep.mubr.bf16.mxu0 %v1423_v28 }
  0x72   :  { %1328 = vmatmul.mubr.bf16.gmra.mrb[40].mxu0 %v1424_v29 }
  0x73   :  { %1331 = vmatprep.mubr.bf16.mxu0 %v1425_v30 }
  0x7a   :  { %1332 = vmatmul.mubr.bf16.gmra.mrb[44].mxu0 %v1426_v31 }
  0x7b   :  { %1335 = vmatprep.mubr.bf16.mxu0 %v1427_v32 }
  0x82   :  { %1336 = vmatmul.mubr.bf16.gmra.mrb[48].mxu0 %v1428_v33 }
  0x83   :  { %1339 = vmatprep.mubr.bf16.mxu0 %v1429_v34 }
  0x8a   :  { %1340 = vmatmul.mubr.bf16.gmra.mrb[52].mxu0 %v1430_v35 }
  0x8b   :  { %1343 = vmatprep.mubr.bf16.mxu0 %v1431_v36 }
  0x92   :  { %1344 = vmatmul.mubr.bf16.gmra.mrb[56].mxu0 %v1432_v37 }
  0x93   :  { %1347 = vmatprep.mubr.bf16.mxu0 %v1433_v38 }
  0x9a   :  { %1348 = vmatmul.mubr.bf16.gmra.mrb[60].mxu0 %v1434_v39 }
  0xf5   :  { %v1289_v51 = vpop.f32.mrb[0].mxu0 }
  0xf6   :  { %v387_v52 = vadd.f32 %v1289_v51, %v1635_v50  ;;  %v378_v53 = vpop.f32.mrb[1].mxu0 }
  0xf7   :  { %v379_v54 = vadd.f32 %v1635_v50, %v378_v53  ;;  %v1290_v55 = vpop.f32.mrb[2].mxu0 }
  0xf8   :  { %v390_v56 = vadd.f32 %v1290_v55, %v1635_v50  ;;  %v381_v57 = vpop.f32.mrb[3].mxu0  ;;  %v635_v59 = vmax.f32 %v387_v52, 0.0 }
  0xf9   :  { %v382_v58 = vadd.f32 %v1635_v50, %v381_v57  ;;  %v633_v61 = vmax.f32 %v379_v54, 0.0 }
  0xfa   :  { %v636_v60 = vmax.f32 %v390_v56, 0.0 }
  0xfb   :  { %v634_v62 = vmax.f32 %v382_v58, 0.0 }
  0xfc   :  { %v1641_v63 = vpack.c.bf16 %v636_v60, %v635_v59 }
  0xfd   :  { %v1293_v0 = vpop.f32.mrb[4].mxu0  ;;  %v1643_v1 = vpack.c.bf16 %v634_v62, %v633_v61 }
  0xfe   :  { %v403_v2 = vadd.f32 %v1293_v0, %v1635_v50  ;;  %v394_v3 = vpop.f32.mrb[5].mxu0 }
  0xff   :  { %v395_v4 = vadd.f32 %v1635_v50, %v394_v3  ;;  %v1294_v5 = vpop.f32.mrb[6].mxu0 }
 0x100   :  { %v406_v6 = vadd.f32 %v1294_v5, %v1635_v50  ;;  %v397_v7 = vpop.f32.mrb[7].mxu0  ;;  %v639_v9 = vmax.f32 %v403_v2, 0.0 }
 0x101   :  { %v398_v8 = vadd.f32 %v1635_v50, %v397_v7  ;;  %v637_v11 = vmax.f32 %v395_v4, 0.0 }
 0x102   :  { %v640_v10 = vmax.f32 %v406_v6, 0.0 }
 0x103   :  { %v638_v12 = vmax.f32 %v398_v8, 0.0 }
 0x104   :  { %v1649_v13 = vpack.c.bf16 %v640_v10, %v639_v9 }
 0x105   :  { %v1651_v14 = vpack.c.bf16 %v638_v12, %v637_v11  ;;  %v1297_v15 = vpop.f32.mrb[8].mxu0 }
 0x106   :  { %v419_v16 = vadd.f32 %v1297_v15, %v1635_v50  ;;  %v410_v17 = vpop.f32.mrb[9].mxu0 }
 0x107   :  { %v411_v18 = vadd.f32 %v1635_v50, %v410_v17  ;;  %v1298_v19 = vpop.f32.mrb[10].mxu0 }
 0x108   :  { %v422_v20 = vadd.f32 %v1298_v19, %v1635_v50  ;;  %v413_v21 = vpop.f32.mrb[11].mxu0  ;;  %v643_v23 = vmax.f32 %v419_v16, 0.0 }
 0x109   :  { %v414_v22 = vadd.f32 %v1635_v50, %v413_v21  ;;  %v641_v25 = vmax.f32 %v411_v18, 0.0 }
 0x10a   :  { %v644_v24 = vmax.f32 %v422_v20, 0.0 }
 0x10b   :  { %v642_v26 = vmax.f32 %v414_v22, 0.0 }
 0x10c   :  { %v1657_v27 = vpack.c.bf16 %v644_v24, %v643_v23 }
 0x10d   :  { %v1659_v28 = vpack.c.bf16 %v642_v26, %v641_v25  ;;  %v1301_v29 = vpop.f32.mrb[12].mxu0 }
 0x10e   :  { %v435_v30 = vadd.f32 %v1301_v29, %v1635_v50  ;;  %v426_v31 = vpop.f32.mrb[13].mxu0 }
 0x10f   :  { %v427_v32 = vadd.f32 %v1635_v50, %v426_v31  ;;  %v1302_v33 = vpop.f32.mrb[14].mxu0 }
 0x110   :  { %v438_v34 = vadd.f32 %v1302_v33, %v1635_v50  ;;  %v429_v35 = vpop.f32.mrb[15].mxu0  ;;  %v647_v37 = vmax.f32 %v435_v30, 0.0 }
 0x111   :  { %v430_v36 = vadd.f32 %v1635_v50, %v429_v35  ;;  %v645_v39 = vmax.f32 %v427_v32, 0.0 }
 0x112   :  { %v648_v38 = vmax.f32 %v438_v34, 0.0 }
 0x113   :  { %v646_v40 = vmax.f32 %v430_v36, 0.0 }
 0x114   :  { %v1665_v41 = vpack.c.bf16 %v648_v38, %v647_v37 }
 0x115   :  { %v1667_v42 = vpack.c.bf16 %v646_v40, %v645_v39  ;;  %v1305_v43 = vpop.f32.mrb[16].mxu0 }
 0x116   :  { %v451_v44 = vadd.f32 %v1305_v43, %v1635_v50  ;;  %v442_v45 = vpop.f32.mrb[17].mxu0 }
 0x117   :  { %v443_v46 = vadd.f32 %v1635_v50, %v442_v45  ;;  %v1306_v47 = vpop.f32.mrb[18].mxu0 }
 0x118   :  { %v454_v51 = vadd.f32 %v1306_v47, %v1635_v50  ;;  %v445_v52 = vpop.f32.mrb[19].mxu0  ;;  %v651_v54 = vmax.f32 %v451_v44, 0.0 }
 0x119   :  { %v446_v53 = vadd.f32 %v1635_v50, %v445_v52  ;;  %v649_v56 = vmax.f32 %v443_v46, 0.0 }
 0x11a   :  { %v652_v55 = vmax.f32 %v454_v51, 0.0 }
 0x11b   :  { %v650_v57 = vmax.f32 %v446_v53, 0.0 }
 0x11c   :  { %v707_v58 = vpack.c.bf16 %v652_v55, %v651_v54 }
 0x11d   :  { %v1309_v59 = vpop.f32.mrb[20].mxu0  ;;  %v706_v60 = vpack.c.bf16 %v650_v57, %v649_v56  ;;  %v754_v56 = vcombine.high %v1627_v48, %v1627_v48 }
 0x11e   :  { %v467_v61 = vadd.f32 %v1309_v59, %v1635_v50  ;;  %v458_v62 = vpop.f32.mrb[21].mxu0 }
 0x11f   :  { %v459_v0 = vadd.f32 %v1635_v50, %v458_v62  ;;  %v1310_v2 = vpop.f32.mrb[22].mxu0  ;;  %1209 = vmatprep.subr.bf16.mxu1 %v706_v60 }
 0x120   :  { %v470_v3 = vadd.f32 %v1310_v2, %v1635_v50  ;;  %v461_v4 = vpop.f32.mrb[23].mxu0  ;;  %1210 = vmatpush3.bf16.msra.mxu1 %v1643_v1  ;;  %v655_v6 = vmax.f32 %v467_v61, 0.0 }
 0x121   :  { %v462_v5 = vadd.f32 %v1635_v50, %v461_v4  ;;  %1211 = vmatprep.subr.bf16.mxu1 %v707_v58  ;;  %v653_v8 = vmax.f32 %v459_v0, 0.0 }
 0x122   :  { %v656_v7 = vmax.f32 %v470_v3, 0.0 }
 0x123   :  { %v654_v9 = vmax.f32 %v462_v5, 0.0 }
 0x124   :  { %v709_v10 = vpack.c.bf16 %v656_v7, %v655_v6  ;;  %1212 = vmatpush3.bf16.msra.mxu1 %v1641_v63 }
 0x125   :  { %v708_v11 = vpack.c.bf16 %v654_v9, %v653_v8  ;;  %v1313_v12 = vpop.f32.mrb[24].mxu0 }
 0x126   :  { %v483_v15 = vadd.f32 %v1313_v12, %v1635_v50  ;;  %v474_v16 = vpop.f32.mrb[25].mxu0 }
 0x127   :  { %v475_v17 = vadd.f32 %v1635_v50, %v474_v16  ;;  %v1314_v18 = vpop.f32.mrb[26].mxu0  ;;  %1213 = vmatprep.subr.bf16.mxu1 %v708_v11 }
 0x128   :  { %v486_v1 = vadd.f32 %v1314_v18, %v1635_v50  ;;  %v477_v19 = vpop.f32.mrb[27].mxu0  ;;  %1214 = vmatpush3.bf16.msra.mxu1 %v1651_v14  ;;  %v659_v21 = vmax.f32 %v483_v15, 0.0 }
 0x129   :  { %v478_v20 = vadd.f32 %v1635_v50, %v477_v19  ;;  %1215 = vmatprep.subr.bf16.mxu1 %v709_v10  ;;  %v657_v63 = vmax.f32 %v475_v17, 0.0 }
 0x12a   :  { %v660_v22 = vmax.f32 %v486_v1, 0.0 }
 0x12b   :  { %v658_v23 = vmax.f32 %v478_v20, 0.0 }
 0x12c   :  { %v711_v24 = vpack.c.bf16 %v660_v22, %v659_v21  ;;  %1216 = vmatpush3.bf16.msra.mxu1 %v1649_v13 }
 0x12d   :  { %v710_v25 = vpack.c.bf16 %v658_v23, %v657_v63  ;;  %v1317_v26 = vpop.f32.mrb[28].mxu0 }
 0x12e   :  { %v499_v29 = vadd.f32 %v1317_v26, %v1635_v50  ;;  %v490_v30 = vpop.f32.mrb[29].mxu0 }
 0x12f   :  { %v491_v31 = vadd.f32 %v1635_v50, %v490_v30  ;;  %v1318_v32 = vpop.f32.mrb[30].mxu0  ;;  %1217 = vmatprep.subr.bf16.mxu1 %v710_v25 }
 0x130   :  { %v502_v14 = vadd.f32 %v1318_v32, %v1635_v50  ;;  %v493_v33 = vpop.f32.mrb[31].mxu0  ;;  %1218 = vmatpush3.bf16.msra.mxu1 %v1659_v28  ;;  %v663_v35 = vmax.f32 %v499_v29, 0.0 }
 0x131   :  { %v494_v34 = vadd.f32 %v1635_v50, %v493_v33  ;;  %1219 = vmatprep.subr.bf16.mxu1 %v711_v24  ;;  %v661_v13 = vmax.f32 %v491_v31, 0.0 }
 0x132   :  { %v664_v36 = vmax.f32 %v502_v14, 0.0 }
 0x133   :  { %v662_v37 = vmax.f32 %v494_v34, 0.0 }
 0x134   :  { %v713_v38 = vpack.c.bf16 %v664_v36, %v663_v35  ;;  %1220 = vmatpush3.bf16.msra.mxu1 %v1657_v27 }
 0x135   :  { %v712_v39 = vpack.c.bf16 %v662_v37, %v661_v13  ;;  %v1321_v40 = vpop.f32.mrb[32].mxu0 }
 0x136   :  { %v515_v43 = vadd.f32 %v1321_v40, %v1635_v50  ;;  %v506_v44 = vpop.f32.mrb[33].mxu0 }
 0x137   :  { %v507_v45 = vadd.f32 %v1635_v50, %v506_v44  ;;  %v1322_v46 = vpop.f32.mrb[34].mxu0  ;;  %1221 = vmatprep.subr.bf16.mxu1 %v712_v39 }
 0x138   :  { %v518_v28 = vadd.f32 %v1322_v46, %v1635_v50  ;;  %v509_v47 = vpop.f32.mrb[35].mxu0  ;;  %1222 = vmatpush3.bf16.msra.mxu1 %v1667_v42  ;;  %v667_v52 = vmax.f32 %v515_v43, 0.0 }
 0x139   :  { %v510_v51 = vadd.f32 %v1635_v50, %v509_v47  ;;  %1223 = vmatprep.subr.bf16.mxu1 %v713_v38  ;;  %v665_v27 = vmax.f32 %v507_v45, 0.0 }
 0x13a   :  { %v668_v53 = vmax.f32 %v518_v28, 0.0 }
 0x13b   :  { %v666_v54 = vmax.f32 %v510_v51, 0.0 }
 0x13c   :  { %v1696_v55 = vpack.c.bf16 %v668_v53, %v667_v52  ;;  %1224 = vmatpush3.bf16.msra.mxu1 %v1665_v41 }
 0x13d   :  { %v1701_v57 = vpack.c.bf16 %v666_v54, %v665_v27  ;;  %v1325_v58 = vpop.f32.mrb[36].mxu0 }
 0x13e   :  { %v531_v59 = vadd.f32 %v1325_v58, %v1635_v50  ;;  %v522_v42 = vpop.f32.mrb[37].mxu0 }
 0x13f   :  { %v523_v60 = vadd.f32 %v1635_v50, %v522_v42  ;;  %v1326_v61 = vpop.f32.mrb[38].mxu0  ;;  %792 = vmatmul.mubr.bf16.vlgmr.msra.gmra.mrb[0].mxu1 %v1629_v49 }
 0x140   :  { %v534_v62 = vadd.f32 %v1326_v61, %v1635_v50  ;;  %v525_v0 = vpop.f32.mrb[39].mxu0  ;;  %831 = vmatprep.mubr.bf16.mxu1 %v754_v56  ;;  %v671_v2 = vmax.f32 %v531_v59, 0.0 }
 0x141   :  { %v526_v41 = vadd.f32 %v1635_v50, %v525_v0  ;;  %v669_v48 = vmax.f32 %v523_v60, 0.0 }
 0x142   :  { %v672_v3 = vmax.f32 %v534_v62, 0.0 }
 0x143   :  { %v670_v4 = vmax.f32 %v526_v41, 0.0 }
 0x144   :  { %v1708_v5 = vpack.c.bf16 %v672_v3, %v671_v2 }
 0x145   :  { %v1710_v6 = vpack.c.bf16 %v670_v4, %v669_v48  ;;  %v1329_v7 = vpop.f32.mrb[40].mxu0 }
 0x146   :  { %v547_v8 = vadd.f32 %v1329_v7, %v1635_v50  ;;  %v538_v9 = vpop.f32.mrb[41].mxu0 }
 0x147   :  { %v539_v10 = vadd.f32 %v1635_v50, %v538_v9  ;;  %v1330_v11 = vpop.f32.mrb[42].mxu0 }
 0x148   :  { %v550_v12 = vadd.f32 %v1330_v11, %v1635_v50  ;;  %v541_v15 = vpop.f32.mrb[43].mxu0  ;;  %v675_v17 = vmax.f32 %v547_v8, 0.0 }
 0x149   :  { %v542_v16 = vadd.f32 %v1635_v50, %v541_v15  ;;  %v673_v1 = vmax.f32 %v539_v10, 0.0 }
 0x14a   :  { %v676_v18 = vmax.f32 %v550_v12, 0.0 }
 0x14b   :  { %v674_v19 = vmax.f32 %v542_v16, 0.0 }
 0x14c   :  { %v1716_v20 = vpack.c.bf16 %v676_v18, %v675_v17 }
 0x14d   :  { %v1718_v21 = vpack.c.bf16 %v674_v19, %v673_v1  ;;  %v1333_v22 = vpop.f32.mrb[44].mxu0 }
 0x14e   :  { %v563_v63 = vadd.f32 %v1333_v22, %v1635_v50  ;;  %v554_v23 = vpop.f32.mrb[45].mxu0 }
 0x14f   :  { %v555_v24 = vadd.f32 %v1635_v50, %v554_v23  ;;  %v1334_v25 = vpop.f32.mrb[46].mxu0 }
 0x150   :  { %v566_v26 = vadd.f32 %v1334_v25, %v1635_v50  ;;  %v557_v29 = vpop.f32.mrb[47].mxu0  ;;  %v679_v31 = vmax.f32 %v563_v63, 0.0 }
 0x151   :  { %v558_v30 = vadd.f32 %v1635_v50, %v557_v29  ;;  %v677_v14 = vmax.f32 %v555_v24, 0.0 }
 0x152   :  { %v680_v32 = vmax.f32 %v566_v26, 0.0 }
 0x153   :  { %v678_v33 = vmax.f32 %v558_v30, 0.0 }
 0x154   :  { %v1724_v34 = vpack.c.bf16 %v680_v32, %v679_v31 }
 0x155   :  { %v1726_v35 = vpack.c.bf16 %v678_v33, %v677_v14  ;;  %v1337_v36 = vpop.f32.mrb[48].mxu0  ;;  %v753_v14 = vcombine.high %v1629_v49, %v1629_v49  ;;  %v1437_v49 = vld [vmem:[%s1824_s2 + $0x50] sm:$0xff]   ;;  %v1438_v33 = vld [vmem:[%s1824_s2 + $0x58] sm:$0xff]  }
 0x156   :  { %v579_v13 = vadd.f32 %v1337_v36, %v1635_v50  ;;  %v570_v37 = vpop.f32.mrb[49].mxu0  ;;  %v1441_v36 = vld [vmem:[%s1824_s2 + $0x70] sm:$0xff]  }
 0x157   :  { %v571_v38 = vadd.f32 %v1635_v50, %v570_v37  ;;  %v1338_v39 = vpop.f32.mrb[50].mxu0 }
 0x158   :  { %v582_v40 = vadd.f32 %v1338_v39, %v1635_v50  ;;  %v573_v43 = vpop.f32.mrb[51].mxu0  ;;  %v683_v45 = vmax.f32 %v579_v13, 0.0  ;;  %v1442_v13 = vld [vmem:[%s1824_s2 + $0x78] sm:$0xff]  }
 0x159   :  { %v574_v44 = vadd.f32 %v1635_v50, %v573_v43  ;;  %v681_v28 = vmax.f32 %v571_v38, 0.0 }
 0x15a   :  { %v684_v46 = vmax.f32 %v582_v40, 0.0 }
 0x15b   :  { %v682_v47 = vmax.f32 %v574_v44, 0.0 }
 0x15c   :  { %v723_v51 = vpack.c.bf16 %v684_v46, %v683_v45 }
 0x15d   :  { %v722_v52 = vpack.c.bf16 %v682_v47, %v681_v28  ;;  %v1341_v53 = vpop.f32.mrb[52].mxu0 }
 0x15e   :  { %v595_v27 = vadd.f32 %v1341_v53, %v1635_v50  ;;  %v586_v54 = vpop.f32.mrb[53].mxu0 }
 0x15f   :  { %v587_v56 = vadd.f32 %v1635_v50, %v586_v54  ;;  %v1342_v58 = vpop.f32.mrb[54].mxu0  ;;  %1231 = vmatprep.subr.bf16.mxu1 %v722_v52  ;;  %v1443_v52 = vld [vmem:[%s1824_s2 + $0x80] sm:$0xff]   ;;  %v1445_v54 = vld [vmem:[%s1824_s2 + $0x90] sm:$0xff]  }
 0x160   :  { %v598_v59 = vadd.f32 %v1342_v58, %v1635_v50  ;;  %v589_v42 = vpop.f32.mrb[55].mxu0  ;;  %1232 = vmatpush3.bf16.msra.mxu1 %v1701_v57  ;;  %v687_v61 = vmax.f32 %v595_v27, 0.0  ;;  %v1444_v27 = vld [vmem:[%s1824_s2 + $0x88] sm:$0xff]   ;;  %v1447_v58 = vld [vmem:[%s1824_s2 + $0xa0] sm:$0xff]  }
 0x161   :  { %v590_v60 = vadd.f32 %v1635_v50, %v589_v42  ;;  %1233 = vmatprep.subr.bf16.mxu1 %v723_v51  ;;  %v685_v0 = vmax.f32 %v587_v56, 0.0  ;;  %v1446_v56 = vld [vmem:[%s1824_s2 + $0x98] sm:$0xff]   ;;  %v1449_v42 = vld [vmem:[%s1824_s2 + $0xb0] sm:$0xff]  }
 0x162   :  { %v688_v62 = vmax.f32 %v598_v59, 0.0  ;;  %v1448_v59 = vld [vmem:[%s1824_s2 + $0xa8] sm:$0xff]  }
 0x163   :  { %v686_v41 = vmax.f32 %v590_v60, 0.0  ;;  %v1450_v60 = vld [vmem:[%s1824_s2 + $0xb8] sm:$0xff]  }
 0x164   :  { %v725_v2 = vpack.c.bf16 %v688_v62, %v687_v61  ;;  %1234 = vmatpush3.bf16.msra.mxu1 %v1696_v55  ;;  %v1135_v61 = vld [vmem:[%s1825_s3 + $0x1] ss:$0 sm:$0xff] }
 0x165   :  { %v724_v3 = vpack.c.bf16 %v686_v41, %v685_v0  ;;  %v1345_v48 = vpop.f32.mrb[56].mxu0 }
 0x166   :  { %v611_v4 = vadd.f32 %v1345_v48, %v1635_v50  ;;  %v602_v7 = vpop.f32.mrb[57].mxu0 }
 0x167   :  { %v603_v8 = vadd.f32 %v1635_v50, %v602_v7  ;;  %v1346_v9 = vpop.f32.mrb[58].mxu0  ;;  %1235 = vmatprep.subr.bf16.mxu1 %v724_v3  ;;  %v1160_v7 = vld [vmem:[%s1825_s3 + $0x2] ss:$0 sm:$0xff] }
 0x168   :  { %v614_v57 = vadd.f32 %v1346_v9, %v1635_v50  ;;  %v605_v10 = vpop.f32.mrb[59].mxu0  ;;  %1236 = vmatpush3.bf16.msra.mxu1 %v1710_v6  ;;  %v691_v12 = vmax.f32 %v611_v4, 0.0 }
 0x169   :  { %v606_v11 = vadd.f32 %v1635_v50, %v605_v10  ;;  %1237 = vmatprep.subr.bf16.mxu1 %v725_v2  ;;  %v689_v55 = vmax.f32 %v603_v8, 0.0 }
 0x16a   :  { %v692_v15 = vmax.f32 %v614_v57, 0.0 }
 0x16b   :  { %v690_v16 = vmax.f32 %v606_v11, 0.0 }
 0x16c   :  { %v727_v17 = vpack.c.bf16 %v692_v15, %v691_v12  ;;  %1238 = vmatpush3.bf16.msra.mxu1 %v1708_v5 }
 0x16d   :  { %v726_v18 = vpack.c.bf16 %v690_v16, %v689_v55  ;;  %v1349_v1 = vpop.f32.mrb[60].mxu0 }
 0x16e   :  { %v627_v19 = vadd.f32 %v1349_v1, %v1635_v50  ;;  %v618_v22 = vpop.f32.mrb[61].mxu0 }
 0x16f   :  { %v619_v63 = vadd.f32 %v1635_v50, %v618_v22  ;;  %v1350_v23 = vpop.f32.mrb[62].mxu0  ;;  %1239 = vmatprep.subr.bf16.mxu1 %v726_v18 }
 0x170   :  { %v630_v6 = vadd.f32 %v1350_v23, %v1635_v50  ;;  %v621_v24 = vpop.f32.mrb[63].mxu0  ;;  %1240 = vmatpush3.bf16.msra.mxu1 %v1718_v21  ;;  %v695_v26 = vmax.f32 %v627_v19, 0.0  ;;  %v1476_v21 = vmov 0.0  }
 0x171   :  { %v622_v25 = vadd.f32 %v1635_v50, %v621_v24  ;;  %1241 = vmatprep.subr.bf16.mxu1 %v727_v17  ;;  %v693_v5 = vmax.f32 %v619_v63, 0.0  ;;  %v1435_v50 = vld [vmem:[%s1824_s2 + $0x40] sm:$0xff]  }
 0x172   :  { %v696_v29 = vmax.f32 %v630_v6, 0.0 }
 0x173   :  { %v694_v30 = vmax.f32 %v622_v25, 0.0 }
 0x174   :  { %v729_v31 = vpack.c.bf16 %v696_v29, %v695_v26  ;;  %1242 = vmatpush3.bf16.msra.mxu1 %v1716_v20  ;;  %v1436_v20 = vld [vmem:[%s1824_s2 + $0x48] sm:$0xff]  }
 0x175   :  { %v728_v32 = vpack.c.bf16 %v694_v30, %v693_v5 }
 0x177   :  { %1243 = vmatprep.subr.bf16.mxu1 %v728_v32 }
 0x178   :  { %1244 = vmatpush3.bf16.msra.mxu1 %v1726_v35  ;;  %v1440_v35 = vld [vmem:[%s1824_s2 + $0x68] sm:$0xff]  }
 0x179   :  { %1245 = vmatprep.subr.bf16.mxu1 %v729_v31 }
 0x17c   :  { %1246 = vmatpush3.bf16.msra.mxu1 %v1724_v34  ;;  %v1439_v34 = vld [vmem:[%s1824_s2 + $0x60] sm:$0xff]   ;;  %s1451_s2 = scalar_lea.vmem %s1070_s28, 32 }
 0x17d   :  { %1351 = vmatprep.subr.bf16.mxu1 %v1476_v21  ;;  %p1452_p0 = scmp.ne.s32.totalorder %s1070_s28, %s1451_s2  ;;  %p1457_p2 = scmp.lt.s32.totalorder %s1451_s2, %s1451_s2 }
 0x17f   :  { %832 = vmatmul.mubr.bf16.vlgmr.msra.gmra.mrb[4].mxu1 %v753_v14  ;;  %p1458_p3 = por %p1457_p2, %p1456_p1 }
 0x180   :  { %1352 = vmatpush3.bf16.msra.mxu1 %v1435_v50  ;;  %1367 = vmatprep.mubr.msk.bf16.mxu1 %vm1477_vm0, %v1476_v21 }
 0x181   :  { %1353 = vmatprep.subr.bf16.mxu1 %v1476_v21  ;;  %p1459_p4 = pnand %p1458_p3, %p1452_p0 }
 0x184   :  { %1354 = vmatpush3.bf16.msra.mxu1 %v1436_v20 }
 0x185   :  { %1355 = vmatprep.subr.bf16.mxu1 %v1476_v21 }
 0x188   :  { %1356 = vmatpush3.bf16.msra.mxu1 %v1437_v49 }
 0x189   :  { %1357 = vmatprep.subr.bf16.mxu1 %v1476_v21 }
 0x18c   :  { %1358 = vmatpush3.bf16.msra.mxu1 %v1438_v33 }
 0x18d   :  { %1359 = vmatprep.subr.bf16.mxu1 %v1476_v21 }
 0x190   :  { %1360 = vmatpush3.bf16.msra.mxu1 %v1439_v34 }
 0x191   :  { %1361 = vmatprep.subr.bf16.mxu1 %v1476_v21 }
 0x194   :  { %1362 = vmatpush3.bf16.msra.mxu1 %v1440_v35 }
 0x195   :  { %1363 = vmatprep.subr.bf16.mxu1 %v1476_v21 }
 0x198   :  { %1364 = vmatpush3.bf16.msra.mxu1 %v1441_v36 }
 0x199   :  { %1365 = vmatprep.subr.bf16.mxu1 %v1476_v21 }
 0x19c   :  { %1366 = vmatpush3.bf16.msra.mxu1 %v1442_v13 }
 0x19d   :  { %1371 = vmatprep.subr.bf16.mxu1 %v1476_v21 }
 0x212   :  { %v1225_v37 = vpop.f32.mrb[0].mxu1 }
 0x213   :  { %v1226_v38 = vpop.f32.mrb[1].mxu1 }
 0x214   :  { %v1227_v39 = vadd.f32 %v1226_v38, %v1225_v37  ;;  %v1228_v40 = vpop.f32.mrb[2].mxu1 }
 0x215   :  { %v1229_v43 = vpop.f32.mrb[3].mxu1 }
 0x252   :  { %v1247_v44 = vpop.f32.mrb[4].mxu1 }
 0x253   :  { %v1248_v45 = vpop.f32.mrb[5].mxu1 }
 0x254   :  { %v1249_v46 = vadd.f32 %v1248_v45, %v1247_v44  ;;  %v1250_v28 = vpop.f32.mrb[6].mxu1 }
 0x255   :  { %v1251_v47 = vpop.f32.mrb[7].mxu1 }
 0x256   :  { %v834_v51 = vadd.f32 %v1249_v46, %v1227_v39 }
 0x258   :  { %v839_v53 = vpack.c.bf16 %v834_v51, %v834_v51 }
 0x25a   :  { %1368 = vmatmul.mubr.bf16.vlgmr.msra.gmra.mrb[8].mxu1 %v839_v53 }
 0x25b   :  { %1372 = vmatpush3.bf16.msra.mxu1 %v1443_v52  ;;  %1387 = vmatprep.mubr.msk.bf16.mxu1 %vm1477_vm0, %v1476_v21 }
 0x25c   :  { %1373 = vmatprep.subr.bf16.mxu1 %v1476_v21 }
 0x25f   :  { %1374 = vmatpush3.bf16.msra.mxu1 %v1444_v27 }
 0x260   :  { %1375 = vmatprep.subr.bf16.mxu1 %v1476_v21 }
 0x263   :  { %1376 = vmatpush3.bf16.msra.mxu1 %v1445_v54 }
 0x264   :  { %1377 = vmatprep.subr.bf16.mxu1 %v1476_v21 }
 0x267   :  { %1378 = vmatpush3.bf16.msra.mxu1 %v1446_v56 }
 0x268   :  { %1379 = vmatprep.subr.bf16.mxu1 %v1476_v21 }
 0x26b   :  { %1380 = vmatpush3.bf16.msra.mxu1 %v1447_v58 }
 0x26c   :  { %1381 = vmatprep.subr.bf16.mxu1 %v1476_v21 }
 0x26f   :  { %1382 = vmatpush3.bf16.msra.mxu1 %v1448_v59 }
 0x270   :  { %1383 = vmatprep.subr.bf16.mxu1 %v1476_v21 }
 0x273   :  { %1384 = vmatpush3.bf16.msra.mxu1 %v1449_v42 }
 0x274   :  { %1385 = vmatprep.subr.bf16.mxu1 %v1476_v21 }
 0x277   :  { %1386 = vmatpush3.bf16.msra.mxu1 %v1450_v60 }
 0x32d   :  { %v944_v62 = vpop.f32.mrb[8].mxu1 }
 0x32e   :  { %v945_v0 = vadd.f32 %v1135_v61, %v944_v62  ;;  %v1369_v41 = vpop.f32.mrb[9].mxu1 }
 0x32f   :  { %v947_v2 = vpop.f32.mrb[10].mxu1 }
 0x330   :  { %v950_v3 = vmax.f32 %v945_v0, 0.0  ;;  %v1370_v48 = vpop.f32.mrb[11].mxu1 }
 0x332   :  { %v951_v4 = vpack.c.bf16 %v950_v3, %v950_v3 }
 0x334   :  { %1388 = vmatmul.mubr.bf16.vlgmr.msra.gmra.mrb[12].mxu1 %v951_v4 }
 0x407   :  { %v1056_v8 = vpop.f32.mrb[12].mxu1 }
 0x408   :  { %v1057_v9 = vadd.f32 %v1160_v7, %v1056_v8  ;;  %v1389_v57 = vpop.f32.mrb[13].mxu1 }
 0x409   :  { %v1059_v10 = vpop.f32.mrb[14].mxu1 }
 0x40a   :  { %1062 = vst [vmem:[#allocation2] sm:$0x3] %v1057_v9  ;;  %v1390_v11 = vpop.f32.mrb[15].mxu1 }
 0x40b   :  { %1462 = shalt.err (!%p1459_p4)
}
 0x40c   :  { %s1463_s3 = scalar_lea.hbm %s1826_s4, 32 }
 0x40d   :  { %p1464_p5 = scmp.ne.s32.totalorder %s1826_s4, %s1463_s3  ;;  %p1467_p6 = scmp.lt.u32.totalorder %s1463_s3, %s1826_s4 }
 0x40f   :  { %p1469_p7 = pnand %p1467_p6, %p1464_p5 }
 0x411   :  { %1472 = shalt.err (!%p1469_p7)
}
 0x412   :  { %1072 = dma.vmem_to_hbm [thread:$0]  %s1070_s28, 32, %s1826_s4, [#allocation3]  }
 0x413   :  { %1473 = dma.done.wait [#allocation3], 32  }
 0x414   :  { %1474 = vsyncadd [#allocation3], 4294967264 }
 0x415   :  { %1076 = vsyncpa [#allocation3], 1 }

</bundles_post_ra>
